<compile_context>
chip_gen: v7x
topology: tpu7x:2x2x1
jax: 0.10.0
libtpu: 0.0.40
codegen_flags: <defaults>
</compile_context>

<pallas_src>
import math

import jax
import jax.numpy as jnp
from jax.experimental import pallas as pl
from jax.experimental.pallas import tpu as pltpu


def _kl_kernel(states_ref, actions_ref, w_old_ref, w_new_ref, out_ref):
    # states_ref : [N, D]      (native dtype)
    # actions_ref: [N, A]
    # w_old_ref  : [D, A]
    # w_new_ref  : [D, A]
    # out_ref    : [1, 1] f32  SMEM scalar output
    act_dim = actions_ref.shape[-1]

    s = states_ref[...]
    a = actions_ref[...]

    # Lane fusion done IN-KERNEL (cheap lane copies on VMEM-resident vregs),
    # not in the wrapper: one MXU push/drain covers both policies.
    w_both = jnp.concatenate([w_old_ref[...], w_new_ref[...]], axis=-1)  # [D, 2A]
    a2 = jnp.concatenate([a, a], axis=-1)                                # [N, 2A]

    # Single MXU pass: means = [mean_old | mean_new], f32 accumulate.
    means = jnp.dot(s, w_both, preferred_element_type=jnp.float32)      # [N, 2A]

    # One full-width residual + square (f32 via promotion against `means`).
    diff = a2 - means
    half_sq = 0.5 * (diff * diff)                                       # [N, 2A]

    # Old-policy half via a lane mask (full-width reduce, no lane slicing).
    lane = jax.lax.broadcasted_iota(jnp.int32, half_sq.shape, dimension=1)
    is_old = lane < act_dim

    # 0.5 * ssq_old  (needed for p = exp(log_p))
    half_ssq_old = jnp.sum(jnp.where(is_old, half_sq, 0.0),
                           axis=-1, keepdims=True)                      # [N, 1]
    # Unmasked full reduce + algebra instead of a second masked select:
    #   sum_all = 0.5*(ssq_old + ssq_new)
    #   log_p - log_q = 0.5*(ssq_new - ssq_old) = sum_all - 2*half_ssq_old
    sum_all = jnp.sum(half_sq, axis=-1, keepdims=True)                  # [N, 1]
    log_diff = sum_all - 2.0 * half_ssq_old                             # [N, 1]

    # Gaussian log-normalizer cancels in log_p - log_q; applied only inside p.
    log_norm = 0.5 * act_dim * math.log(2.0 * math.pi)
    p = jnp.exp(-half_ssq_old - log_norm)                               # EUP

    out_ref[0, 0] = jnp.sum(p * log_diff)


def kl_div_pallas(states, actions, w_old, w_new):
    """sum_i exp(log_p_i) * (log_p_i - log_q_i), fused in one kernel."""
    n, d = states.shape
    _, a = actions.shape
    assert w_old.shape == (d, a) and w_new.shape == (d, a)

    out = pl.pallas_call(
        _kl_kernel,
        out_shape=jax.ShapeDtypeStruct((1, 1), jnp.float32),
        # No grid: shapes are tiny; grid=(1,) would only add per-step overhead.
        in_specs=[
            pl.BlockSpec(memory_space=pltpu.MemorySpace.VMEM),
            pl.BlockSpec(memory_space=pltpu.MemorySpace.VMEM),
            pl.BlockSpec(memory_space=pltpu.MemorySpace.VMEM),
            pl.BlockSpec(memory_space=pltpu.MemorySpace.VMEM),
        ],
        # Scalar result -> SMEM (avoids a masked partial store into a padded
        # [8,128] VMEM tile).
        out_specs=pl.BlockSpec(memory_space=pltpu.MemorySpace.SMEM),
    )(states, actions, w_old, w_new)
    return out[0, 0]


class PPO_LOSS:
    """JAX/Pallas port of the PyTorch PPO_LOSS module."""

    def __init__(self, trajectory_length, simulations, max_ent=0, TRPO=0, PPO=0, beta=None):
        self.simulations = simulations
        self.trajectory_length = trajectory_length
        self.max_ent = max_ent

    def KL_div(self, flat_states, flat_actions, policy_w, old_policy_w):
        # policy / old_policy are linear-Gaussian policies parameterized by
        # weight matrices; the full KL computation runs inside the kernel.
        return kl_div_pallas(flat_states, flat_actions, old_policy_w, policy_w)

    def forward(self, policy, state_tensor, action_tensor, reward_tensor, cumulative_rollout):
        # Matches the PyTorch module exactly: forward returns None.
        return None

    def __call__(self, *args, **kwargs):
        return self.forward(*args, **kwargs)


def _reference_kl(states, actions, w_old, w_new):
    """Plain-JAX reference (original, un-fused formulation) for checking."""
    mean_old = states @ w_old
    mean_new = states @ w_new
    act_dim = actions.shape[-1]
    log_norm = 0.5 * act_dim * math.log(2.0 * math.pi)
    log_p = -0.5 * jnp.sum((actions - mean_old) ** 2, axis=-1) - log_norm
    log_q = -0.5 * jnp.sum((actions - mean_new) ** 2, axis=-1) - log_norm
    return jnp.sum(jnp.exp(log_p) * (log_p - log_q))


if __name__ == "__main__":
    trajectory_length = 8
    simulations = 2
    N = trajectory_length * simulations   # flat batch of (state, action) pairs
    D = 32                                # state dim
    A = 8                                 # action dim

    key = jax.random.PRNGKey(0)
    k_s, k_a, k_wo, k_wn = jax.random.split(key, 4)

    flat_states = jax.random.normal(k_s, (N, D), dtype=jnp.float32)
    flat_actions = jax.random.normal(k_a, (N, A), dtype=jnp.float32)
    # Deterministic "checkpoint-free" policy parameters.
    w_old = 0.05 * jax.random.normal(k_wo, (D, A), dtype=jnp.float32)
    w_new = w_old + 0.01 * jax.random.normal(k_wn, (D, A), dtype=jnp.float32)

    loss_mod = PPO_LOSS(trajectory_length, simulations)

    # forward() semantics: returns None, exactly like the PyTorch module.
    assert loss_mod(None, flat_states, flat_actions, None, None) is None

    kl = loss_mod.KL_div(flat_states, flat_actions, policy_w=w_new, old_policy_w=w_old)
    kl = jax.block_until_ready(kl)

    ref = _reference_kl(flat_states, flat_actions, w_old, w_new)
    assert jnp.allclose(kl, ref, rtol=1e-5, atol=1e-5), (kl, ref)

    print("KERNEL_OK")
</pallas_src>

<mosaic_0001>
module attributes {stable_mosaic.version = 11 : i64} {
  func.func @_kl_kernel(%arg0: memref<16x32xf32, #tpu.memory_space<vmem>>, %arg1: memref<16x8xf32, #tpu.memory_space<vmem>>, %arg2: memref<32x8xf32, #tpu.memory_space<vmem>>, %arg3: memref<32x8xf32, #tpu.memory_space<vmem>>, %arg4: memref<1x1xf32, #tpu.memory_space<smem>>) attributes {dimension_semantics = [], scalar_prefetch = 0 : i64, scratch_operands = 0 : i64, tpu.core_type = #tpu.core_type<tc>} {
    %c0 = arith.constant 0 : index
    %c0_0 = arith.constant 0 : index
    %0 = vector.load %arg0[%c0, %c0_0] : memref<16x32xf32, #tpu.memory_space<vmem>>, vector<16x32xf32>
    %c0_1 = arith.constant 0 : index
    %c0_2 = arith.constant 0 : index
    %1 = vector.load %arg1[%c0_1, %c0_2] : memref<16x8xf32, #tpu.memory_space<vmem>>, vector<16x8xf32>
    %c0_3 = arith.constant 0 : index
    %c0_4 = arith.constant 0 : index
    %2 = vector.load %arg2[%c0_3, %c0_4] : memref<32x8xf32, #tpu.memory_space<vmem>>, vector<32x8xf32>
    %c0_5 = arith.constant 0 : index
    %c0_6 = arith.constant 0 : index
    %3 = vector.load %arg3[%c0_5, %c0_6] : memref<32x8xf32, #tpu.memory_space<vmem>>, vector<32x8xf32>
    %4 = tpu.concatenate %2, %3 in 1 : vector<32x8xf32>, vector<32x8xf32> -> vector<32x16xf32>
    %5 = tpu.concatenate %1, %1 in 1 : vector<16x8xf32>, vector<16x8xf32> -> vector<16x16xf32>
    %cst = arith.constant dense<0.000000e+00> : vector<16x16xf32>
    %6 = tpu.matmul %0, %4, %cst {dimension_numbers = #tpu.dot_dimension_numbers<[1], [0], [0], [1], [0, 0, 1, 1], [], []>} : vector<16x32xf32>, vector<32x16xf32>, vector<16x16xf32> -> vector<16x16xf32>
    %7 = arith.subf %5, %6 : vector<16x16xf32>
    %8 = arith.mulf %7, %7 : vector<16x16xf32>
    %cst_7 = arith.constant 5.000000e-01 : f32
    %9 = vector.broadcast %cst_7 : f32 to vector<16x16xf32>
    %10 = arith.mulf %9, %8 : vector<16x16xf32>
    %11 = tpu.iota {dimensions = array<i32: 1>} : vector<16x16xi32>
    %c8_i32 = arith.constant 8 : i32
    %12 = vector.broadcast %c8_i32 : i32 to vector<16x16xi32>
    %13 = arith.cmpi slt, %11, %12 : vector<16x16xi32>
    %cst_8 = arith.constant 0.000000e+00 : f32
    %14 = vector.broadcast %cst_8 : f32 to vector<16x16xf32>
    %15 = arith.select %13, %10, %14 : vector<16x16xi1>, vector<16x16xf32>
    %cst_9 = arith.constant dense<0.000000e+00> : vector<16xf32>
    %16 = vector.multi_reduction <add>, %15, %cst_9 [1] : vector<16x16xf32> to vector<16xf32>
    %17 = vector.shape_cast %16 : vector<16xf32> to vector<16x1xf32>
    %cst_10 = arith.constant dense<0.000000e+00> : vector<16xf32>
    %18 = vector.multi_reduction <add>, %10, %cst_10 [1] : vector<16x16xf32> to vector<16xf32>
    %19 = vector.shape_cast %18 : vector<16xf32> to vector<16x1xf32>
    %cst_11 = arith.constant 2.000000e+00 : f32
    %20 = vector.broadcast %cst_11 : f32 to vector<16x1xf32>
    %21 = arith.mulf %20, %17 : vector<16x1xf32>
    %22 = arith.subf %19, %21 : vector<16x1xf32>
    %cst_12 = arith.constant 0.000000e+00 : f32
    %23 = vector.broadcast %cst_12 : f32 to vector<16x1xf32>
    %24 = arith.subf %23, %17 : vector<16x1xf32>
    %cst_13 = arith.constant 7.35150814 : f32
    %25 = vector.broadcast %cst_13 : f32 to vector<16x1xf32>
    %26 = arith.subf %24, %25 : vector<16x1xf32>
    %27 = math.exp %26 : vector<16x1xf32>
    %28 = arith.mulf %27, %22 : vector<16x1xf32>
    %29 = vector.shape_cast %28 : vector<16x1xf32> to vector<1x16x1xf32>
    %cst_14 = arith.constant dense<0.000000e+00> : vector<1xf32>
    %30 = vector.multi_reduction <add>, %29, %cst_14 [1, 2] : vector<1x16x1xf32> to vector<1xf32>
    %31 = vector.shape_cast %30 : vector<1xf32> to vector<1x1x1xf32>
    %32 = vector.extract %31[0, 0, 0] : f32 from vector<1x1x1xf32>
    %c0_15 = arith.constant 0 : index
    %c0_16 = arith.constant 0 : index
    %33 = memref.load %arg4[%c0_15, %c0_16] : memref<1x1xf32, #tpu.memory_space<smem>>
    memref.store %32, %arg4[%c0_15, %c0_16] : memref<1x1xf32, #tpu.memory_space<smem>>
    return
  }
}

</mosaic_0001>

<bundles_post_ra>
// kernel: tpu_custom_call.1
= control target key start
LH: loop header
LB: loop body
LE: loop exit
PB: predicated region body
PF: predicated region fallthrough
CT: control target
= control target key end

     0   :  { %vm61_vm0 = vcmask 261120   ;;  %s268_s25 = smov 8   ;;  %s351_s0 = inlined_call_operand.vmem [shape: f32[16,32], index: 0, kind: input, shape index: {}]   ;;  %s352_s1 = inlined_call_operand.vmem [shape: f32[16,8], index: 1, kind: input, shape index: {}]   ;;  %s353_s2 = inlined_call_operand.vmem [shape: f32[32,8], index: 2, kind: input, shape index: {}]   ;;  %s354_s3 = inlined_call_operand.vmem [shape: f32[32,8], index: 3, kind: input, shape index: {}]   ;;  %s355_s4 = inlined_call_operand.hbm [shape: f32[1,1], index: 4, kind: output, shape index: {}]  }
   0x1   :  { %v26_v0 = vld [vmem:[%s354_s3] sm:$0xff]  ;;  %v27_v1 = vld [vmem:[%s354_s3 + $0x8] sm:$0xff]  ;;  %v28_v2 = vld [vmem:[%s354_s3 + $0x10] sm:$0xff] }
   0x2   :  { %v242_v3 = vpack.i.bf16 %v27_v1, %v26_v0  ;;  %v29_v4 = vld [vmem:[%s354_s3 + $0x18] sm:$0xff]  ;;  %v18_v5 = vld [vmem:[%s351_s0] sm:$0xff] }
   0x3   :  { %v247_v6 = vpack.i.bf16 %v29_v4, %v28_v2  ;;  %227 = vmatprep.mubr.msk.f32.mxu0 %vm61_vm0, %v18_v5  ;;  %v20_v7 = vld [vmem:[%s352_s1] sm:$0xff] }
   0x4   :  { %243 = vrot.lane.b32.xlu0 %v242_v3, %s268_s25  ;;  %53 = vrot.lane.b32.xlu1 %v20_v7, %s268_s25 }
   0x5   :  { %9 = vsyncpa [#allocation3], 0  ;;  %v21_v8 = vld [vmem:[%s352_s1 + $0x8] sm:$0xff]  ;;  %v22_v10 = vld [vmem:[%s353_s2] sm:$0xff]  ;;  %vm46_vm1 = vcmask 64512   ;;  %v149_v28 = vlaneseq  ;;  %vm154_vm3 = vcmask 130048  }
   0x6   :  { %v23_v11 = vld [vmem:[%s353_s2 + $0x8] sm:$0xff]  ;;  %v24_v18 = vld [vmem:[%s353_s2 + $0x10] sm:$0xff]  ;;  %v25_v19 = vld [vmem:[%s353_s2 + $0x18] sm:$0xff]  ;;  %vm181_vm4 = vcmask 7168   ;;  %s256_s13 = scalar_lea.hbm %s355_s4, 16 }
   0x7   :  { %v19_v25 = vld [vmem:[%s351_s0 + $0x8] sm:$0xff]  ;;  %v150_v31 = vand.u32 127, %v149_v28  ;;  %p257_p0 = scmp.ne.s32.totalorder %s355_s4, %s256_s13  ;;  %p260_p1 = scmp.lt.u32.totalorder %s256_s13, %s355_s4 }
   0x8   :  { %248 = vrot.lane.b32.xlu0 %v247_v6, %s268_s25  ;;  %55 = vrot.lane.b32.xlu1 %v21_v8, %s268_s25 }
   0x9   :  { %vm151_vm2 = vcmp.lt.s32.totalorder %v150_v31, 8  ;;  %p262_p2 = pnand %p260_p1, %p257_p0 }
  0x76   :  { %v244_v9 = vpop.permute.xlu0 %243  ;;  %v54_v26 = vpop.permute.xlu1 %53 }
  0x77   :  { %v246_v12 = vunpack.i.h.bf16 %v244_v9  ;;  %v245_v13 = vunpack.i.l.bf16 %v244_v9  ;;  %v59_v33 = vsel %vm46_vm1, %v20_v7, %v54_v26 }
  0x79   :  { %v47_v14 = vsel %vm46_vm1, %v22_v10, %v245_v13  ;;  %v48_v15 = vsel %vm46_vm1, %v23_v11, %v246_v12 }
  0x7a   :  { %v249_v16 = vpop.permute.xlu0 %248  ;;  %v230_v17 = vpack.c.bf16 %v48_v15, %v47_v14  ;;  %v56_v27 = vpop.permute.xlu1 %55 }
  0x7b   :  { %v251_v20 = vunpack.i.h.bf16 %v249_v16  ;;  %v250_v21 = vunpack.i.l.bf16 %v249_v16  ;;  %v60_v29 = vsel %vm46_vm1, %v21_v8, %v56_v27 }
  0x7c   :  { %231 = vmatprep.subr.bf16.mxu0 %v230_v17 }
  0x7d   :  { %233 = vmatpush3.bf16.msra.mxu0 %v230_v17  ;;  %v49_v22 = vsel %vm46_vm1, %v24_v18, %v250_v21  ;;  %v50_v23 = vsel %vm46_vm1, %v25_v19, %v251_v20 }
  0x7e   :  { %v234_v24 = vpack.c.bf16 %v50_v23, %v49_v22 }
  0x80   :  { %235 = vmatprep.subr.bf16.mxu0 %v234_v24 }
  0x81   :  { %237 = vmatpush3.bf16.msra.mxu0 %v234_v24 }
  0x84   :  { %228 = vmatmul.mubr.msk.f32.vlgmr.msra.gmra.mrb[0].mxu0 %vm61_vm0, %v19_v25 }
 0x157   :  { %v229_v30 = vpop.f32.mrb[0].mxu0 }
 0x158   :  { %v144_v32 = vsub.f32 %v60_v29, %v229_v30  ;;  %v134_v34 = vpop.f32.mrb[1].mxu0 }
 0x159   :  { %v143_v35 = vsub.f32 %v59_v33, %v134_v34 }
 0x15a   :  { %v146_v36 = vmul.f32 %v144_v32, %v144_v32 }
 0x15b   :  { %v145_v37 = vmul.f32 %v143_v35, %v143_v35 }
 0x15c   :  { %v148_v38 = vmul.f32 0.5, %v146_v36 }
 0x15d   :  { %v147_v39 = vmul.f32 0.5, %v145_v37 }
 0x15e   :  { %v153_v40 = vsel %vm151_vm2, %v148_v38, 0.0  ;;  %v164_v45 = vsel %vm154_vm3, %v148_v38, 0.0 }
 0x15f   :  { %v158_v41 = vsel %vm154_vm3, %v153_v40, 0.0  ;;  %v152_v42 = vsel %vm151_vm2, %v147_v39, 0.0  ;;  %v161_v44 = vsel %vm154_vm3, %v147_v39, 0.0 }
 0x160   :  { %159 = vadd.xlane.f32.xlu1 %v158_v41  ;;  %v155_v43 = vsel %vm154_vm3, %v152_v42, 0.0 }
 0x161   :  { %156 = vadd.xlane.f32.xlu0 %v155_v43 }
 0x165   :  { %162 = vadd.xlane.f32.xlu0 %v161_v44 }
 0x169   :  { %165 = vadd.xlane.f32.xlu0 %v164_v45 }
 0x1ed   :  { %v160_v46 = vpop.xlane.xlu1 %159 }
 0x1ee   :  { %v172_v47 = vsub.f32 0.0, %v160_v46  ;;  %v157_v48 = vpop.xlane.xlu0 %156  ;;  %v168_v56 = vmul.f32 2.0, %v160_v46 }
 0x1ef   :  { %v171_v49 = vsub.f32 0.0, %v157_v48  ;;  %v167_v57 = vmul.f32 2.0, %v157_v48 }
 0x1f0   :  { %v212_v50 = vadd.f32 -7.351508, %v172_v47 }
 0x1f1   :  { %v211_v51 = vadd.f32 -7.351508, %v171_v49 }
 0x1f2   :  { %v177_v52 = vmul.f32 1.442695, %v212_v50  ;;  %v163_v54 = vpop.xlane.xlu0 %162 }
 0x1f3   :  { %v175_v53 = vmul.f32 1.442695, %v211_v51  ;;  %v169_v60 = vsub.f32 %v163_v54, %v167_v57 }
 0x1f4   :  { %252 = vpow2.f32 %v177_v52 }
 0x1f5   :  { %254 = vpow2.f32 %v175_v53 }
 0x1f6   :  { %v166_v55 = vpop.xlane.xlu0 %165 }
 0x1f7   :  { %v170_v58 = vsub.f32 %v166_v55, %v168_v56 }
 0x1fe   :  { %v253_v59 = vpop.eup %252 }
 0x1ff   :  { %v255_v61 = vpop.eup %254  ;;  %v180_v62 = vmul.f32 %v253_v59, %v170_v58 }
 0x200   :  { %v179_v63 = vmul.f32 %v255_v61, %v169_v60 }
 0x201   :  { %v183_v0 = vsel %vm181_vm4, %v180_v62, 0.0 }
 0x202   :  { %v182_v1 = vsel %vm181_vm4, %v179_v63, 0.0 }
 0x203   :  { %v184_v2 = vadd.f32 %v183_v0, %v182_v1 }
 0x205   :  { %185 = vadd.xlane.f32.xlu1 %v184_v2 }
 0x292   :  { %v186_v3 = vpop.xlane.xlu1 %185 }
 0x293   :  { %v187_v4 = vrot.slane %v186_v3, 4 }
 0x295   :  { %v188_v5 = vadd.f32 %v187_v4, %v186_v3 }
 0x297   :  { %v189_v6 = vrot.slane %v188_v5, 2 }
 0x299   :  { %v190_v7 = vadd.f32 %v189_v6, %v188_v5 }
 0x29b   :  { %v191_v8 = vrot.slane %v190_v7, 1 }
 0x29d   :  { %v192_v9 = vadd.f32 %v191_v8, %v190_v7 }
 0x29f   :  { %238 = vpush %v192_v9 }
 0x2d0   :  { %s239_s0 = spop %238 }
 0x2d1   :  { %195 = sst [smem:[#allocation2]] %s239_s0 }
 0x2d2   :  { %265 = shalt.err (!%p262_p2)
}
 0x2d3   :  { %s269_s18 = smov [#allocation2]  }
 0x2d4   :  { %203 = dma.smem_to_hbm %s269_s18, 16, %s355_s4, [#allocation3]  }
 0x2d5   :  { %266 = dma.done.wait [#allocation3], 16  }
 0x2d6   :  { %267 = vsyncadd [#allocation3], 4294967280 }
 0x2d7   :  { %207 = sfence }
 0x2d8   :  { %208 = vsyncpa [#allocation3], 1 }

</bundles_post_ra>
